<compile_context>
chip_gen: v7x
topology: tpu7x:2x2x1
jax: 0.10.0
libtpu: 0.0.40
codegen_flags: <defaults>
</compile_context>

<pallas_src>
import functools

import jax
import jax.numpy as jnp
from jax.experimental import pallas as pl
from jax.experimental.pallas import tpu as pltpu


def _round_up(x: int, m: int) -> int:
    return (x + m - 1) // m * m


def _largest_divisor_tile(total: int, unit: int, cap: int) -> int:
    """Largest multiple of `unit` that divides `total` and is <= cap."""
    best = unit
    n = total // unit
    for d in range(1, n + 1):
        size = d * unit
        if n % d == 0 and size <= cap:
            best = size
    return best


# --------------------------------- kernels ---------------------------------

def _head_kernel_fused(x_ref, w_ref, b_ref, o_ref):
    # x_ref: (B_pad, D_pad) -- resident in VMEM across all grid steps.
    # w_ref: (D_pad, tn)    -- streamed (double-buffered by BlockSpec).
    # b_ref: (1, tn)        o_ref: (B_pad, tn)
    acc = jnp.dot(x_ref[...], w_ref[...], preferred_element_type=jnp.float32)
    o_ref[...] = (acc + b_ref[...].astype(jnp.float32)).astype(o_ref.dtype)


def _head_kernel_split(x_ref, w_ref, b_ref, o_ref, acc_ref):
    # Fallback: D reduction split across grid axis 1 (only for gigantic D).
    k = pl.program_id(1)

    @pl.when(k == 0)
    def _():
        acc_ref[...] = jnp.zeros_like(acc_ref)

    acc_ref[...] += jnp.dot(
        x_ref[...], w_ref[...], preferred_element_type=jnp.float32
    )

    @pl.when(k == pl.num_programs(1) - 1)
    def _():
        o_ref[...] = (acc_ref[...] + b_ref[...].astype(jnp.float32)).astype(
            o_ref.dtype
        )


# ------------------------- one-time parameter prep -------------------------

def init_head_params(weight, bias, *, compute_dtype=jnp.bfloat16):
    """weight: (num_classes, D) torch nn.Linear layout; bias: (num_classes,).

    Pads to lane/sublane-friendly shapes and casts to the streaming dtype
    ONCE, so the per-call forward never re-reads/re-writes W for padding.
    Returns (w_p: (D_pad, C_pad) compute_dtype, b_p: (1, C_pad) f32).
    """
    C, D = weight.shape
    D_pad = _round_up(D, 128)
    C_pad = _round_up(C, 128)
    w = jnp.asarray(weight).T.astype(compute_dtype)          # (D, C)
    if (D_pad, C_pad) != (D, C):
        w = jnp.zeros((D_pad, C_pad), compute_dtype).at[:D, :C].set(w)
    b = jnp.zeros((1, C_pad), jnp.float32).at[0, :C].set(
        jnp.asarray(bias).astype(jnp.float32))
    return w, b


# --------------------------------- forward ---------------------------------

_VMEM_BUDGET = 44 * 1024 * 1024   # working-set cap (safe on v7x's 64 MiB VMEM)
_VMEM_LIMIT = 56 * 1024 * 1024    # scoped-VMEM limit handed to Mosaic


@functools.partial(
    jax.jit, static_argnames=("num_classes", "return_features", "tile_n"))
def standard_transformer_head(x, w_p, b_p, *, num_classes,
                              return_features=False, tile_n=2048):
    """x: (B, S, D); (w_p, b_p) from init_head_params().

    Returns (B, num_classes), or ((B, num_classes), (B, D)) if return_features.
    """
    B, S, D = x.shape
    D_pad, C_pad = w_p.shape
    compute_dtype = w_p.dtype
    out_dtype = x.dtype

    # Take the CLS token on the host side: only B*D activation bytes move.
    x_cls = x[:, 0, :]                                       # (B, D)

    # bf16 packs 2 rows per sublane -> pad B to 16 so stores are unmasked.
    B_pad = _round_up(max(B, 16), 16)
    x_p = jnp.zeros((B_pad, D_pad), compute_dtype).at[:B, :D].set(
        x_cls.astype(compute_dtype))

    w_isz = jnp.dtype(compute_dtype).itemsize
    o_isz = jnp.dtype(out_dtype).itemsize

    def fused_fits(tn):
        return (2 * D_pad * tn * w_isz            # double-buffered W tile
                + 2 * B_pad * tn * o_isz          # double-buffered out tile
                + 2 * tn * 4                      # bias tile
                + B_pad * D_pad * w_isz           # resident x
                ) <= _VMEM_BUDGET

    # Largest lane-dense tn that divides C_pad and fits the VMEM budget.
    tn = None
    for cand in sorted({min(tile_n, C_pad), 2048, 1024, 512, 256, 128},
                       reverse=True):
        if cand <= C_pad and C_pad % cand == 0 and fused_fits(cand):
            tn = cand
            break

    cost = pl.CostEstimate(
        flops=2 * B * D * num_classes,
        transcendentals=0,
        bytes_accessed=(D_pad * C_pad * w_isz      # streamed weight (actual)
                        + B * D * o_isz            # CLS activations
                        + B * num_classes * o_isz  # output
                        ),
    )

    if tn is not None:
        # Collapsed reduction: 1-D, fully "parallel" grid over C tiles.
        out_p = pl.pallas_call(
            _head_kernel_fused,
            out_shape=jax.ShapeDtypeStruct((B_pad, C_pad), out_dtype),
            grid=(C_pad // tn,),
            in_specs=[
                pl.BlockSpec((B_pad, D_pad), lambda j: (0, 0)),  # x resident
                pl.BlockSpec((D_pad, tn), lambda j: (0, j)),     # W streamed
                pl.BlockSpec((1, tn), lambda j: (0, j)),         # bias
            ],
            out_specs=pl.BlockSpec((B_pad, tn), lambda j: (0, j)),
            compiler_params=pltpu.CompilerParams(
                dimension_semantics=("parallel",),
                vmem_limit_bytes=_VMEM_LIMIT,
            ),
            cost_estimate=cost,
        )(x_p, w_p, b_p)
    else:
        # Fallback (only for extremely large D): split the reduction, f32 acc.
        tn_f = _largest_divisor_tile(C_pad, 128, 1024)
        tk = _largest_divisor_tile(
            D_pad, 128, max(128, _VMEM_BUDGET // (4 * tn_f * w_isz)))
        out_p = pl.pallas_call(
            _head_kernel_split,
            out_shape=jax.ShapeDtypeStruct((B_pad, C_pad), out_dtype),
            grid=(C_pad // tn_f, D_pad // tk),
            in_specs=[
                pl.BlockSpec((B_pad, tk), lambda j, k: (0, k)),
                pl.BlockSpec((tk, tn_f), lambda j, k: (k, j)),
                pl.BlockSpec((1, tn_f), lambda j, k: (0, j)),
            ],
            out_specs=pl.BlockSpec((B_pad, tn_f), lambda j, k: (0, j)),
            scratch_shapes=[pltpu.VMEM((B_pad, tn_f), jnp.float32)],
            compiler_params=pltpu.CompilerParams(
                dimension_semantics=("parallel", "arbitrary"),
                vmem_limit_bytes=_VMEM_LIMIT,
            ),
            cost_estimate=cost,
        )(x_p, w_p, b_p)

    out = out_p[:B, :num_classes]
    if return_features:
        return out, x_cls
    return out


def reference(x, weight, bias):
    # nn.Linear: x[:, 0, :] @ weight.T + bias   (weight in (C, D) torch layout)
    return x[:, 0, :] @ weight.T + bias


if __name__ == "__main__":
    key = jax.random.PRNGKey(0)
    B, S, D, C = 2, 8, 32, 10

    kx, kw, kb = jax.random.split(key, 3)
    x = jax.random.normal(kx, (B, S, D), dtype=jnp.float32)

    # nn.Linear(D, C)-style init: weight (C, D), bias (C,), uniform(+-1/sqrt(D)).
    bound = 1.0 / (D ** 0.5)
    weight = jax.random.uniform(
        kw, (C, D), minval=-bound, maxval=bound, dtype=jnp.float32)
    bias = jax.random.uniform(
        kb, (C,), minval=-bound, maxval=bound, dtype=jnp.float32)

    ref = reference(x, weight, bias)

    # f32-streaming path: exact check against the reference.
    w32, b32 = init_head_params(weight, bias, compute_dtype=jnp.float32)
    out32 = jax.block_until_ready(
        standard_transformer_head(x, w32, b32, num_classes=C))
    assert out32.shape == (B, C)
    assert jnp.allclose(out32, ref, atol=1e-5, rtol=1e-5), "f32 path mismatch"

    # Default bf16 weight-streaming path (production config) + return_features.
    wbf, bbf = init_head_params(weight, bias)          # bf16 weights, f32 bias
    out_bf, feats = jax.block_until_ready(
        standard_transformer_head(x, wbf, bbf, num_classes=C,
                                  return_features=True))
    assert out_bf.shape == (B, C)
    assert feats.shape == (B, D)
    assert jnp.allclose(feats, x[:, 0, :], atol=1e-6, rtol=1e-6)
    assert jnp.allclose(out_bf, ref, atol=3e-2, rtol=3e-2), "bf16 path mismatch"

    print("KERNEL_OK")
</pallas_src>

<mosaic_0001>
module attributes {stable_mosaic.version = 11 : i64} {
  func.func @_head_kernel_fused(%arg0: i32, %arg1: memref<16x128xf32, #tpu.memory_space<vmem>>, %arg2: memref<128x128xf32, #tpu.memory_space<vmem>>, %arg3: memref<1x128xf32, #tpu.memory_space<vmem>>, %arg4: memref<16x128xf32, #tpu.memory_space<vmem>>) attributes {dimension_semantics = [#tpu.dimension_semantics<parallel>], iteration_bounds = array<i64: 1>, scalar_prefetch = 0 : i64, scratch_operands = 0 : i64, tpu.core_type = #tpu.core_type<tc>, window_params = [{pipeline_mode = #tpu.pipeline_mode<synchronous>, transform_indices = @transform_0, window_bounds = array<i64: 16, 128>}, {transform_indices = @transform_1, window_bounds = array<i64: 128, 128>}, {transform_indices = @transform_2, window_bounds = array<i64: 1, 128>}, {transform_indices = @transform_3, window_bounds = array<i64: 16, 128>}]} {
    %c0 = arith.constant 0 : index
    %c0_0 = arith.constant 0 : index
    %0 = vector.load %arg1[%c0, %c0_0] : memref<16x128xf32, #tpu.memory_space<vmem>>, vector<16x128xf32>
    %c0_1 = arith.constant 0 : index
    %c0_2 = arith.constant 0 : index
    %1 = vector.load %arg2[%c0_1, %c0_2] : memref<128x128xf32, #tpu.memory_space<vmem>>, vector<128x128xf32>
    %cst = arith.constant dense<0.000000e+00> : vector<16x128xf32>
    %2 = tpu.matmul %0, %1, %cst {dimension_numbers = #tpu.dot_dimension_numbers<[1], [0], [0], [1], [0, 0, 1, 1], [], []>} : vector<16x128xf32>, vector<128x128xf32>, vector<16x128xf32> -> vector<16x128xf32>
    %c0_3 = arith.constant 0 : index
    %c0_4 = arith.constant 0 : index
    %3 = vector.load %arg3[%c0_3, %c0_4] : memref<1x128xf32, #tpu.memory_space<vmem>>, vector<1x128xf32>
    %4 = vector.broadcast %3 : vector<1x128xf32> to vector<16x128xf32>
    %5 = arith.addf %2, %4 : vector<16x128xf32>
    %c0_5 = arith.constant 0 : index
    %c0_6 = arith.constant 0 : index
    %6 = vector.load %arg4[%c0_5, %c0_6] : memref<16x128xf32, #tpu.memory_space<vmem>>, vector<16x128xf32>
    tpu.vector_store %arg4[%c0_5, %c0_6], %5 {strides = array<i32>} : memref<16x128xf32, #tpu.memory_space<vmem>>, vector<16x128xf32>,
    return
  }
  func.func @transform_0(%arg0: i32) -> (i32, i32) {
    %c0_i32 = arith.constant 0 : i32
    %c0_i32_0 = arith.constant 0 : i32
    %c0_i32_1 = arith.constant 0 : i32
    return %c0_i32, %c0_i32_0 : i32, i32
  }
  func.func @transform_1(%arg0: i32) -> (i32, i32) {
    %c0_i32 = arith.constant 0 : i32
    %c0_i32_0 = arith.constant 0 : i32
    return %c0_i32, %arg0 : i32, i32
  }
  func.func @transform_2(%arg0: i32) -> (i32, i32) {
    %c0_i32 = arith.constant 0 : i32
    %c0_i32_0 = arith.constant 0 : i32
    return %c0_i32, %arg0 : i32, i32
  }
  func.func @transform_3(%arg0: i32) -> (i32, i32) {
    %c0_i32 = arith.constant 0 : i32
    %c0_i32_0 = arith.constant 0 : i32
    return %c0_i32, %arg0 : i32, i32
  }
}

</mosaic_0001>

<bundles_post_ra>
// kernel: standard_transformer_head.1
= control target key start
LH: loop header
LB: loop body
LE: loop exit
PB: predicated region body
PF: predicated region fallthrough
CT: control target
= control target key end

     0   :  { %8 = vsyncpa [#allocation3], 0  ;;  %s248_s12 = smov [#allocation2]   ;;  %s298_s0 = inlined_call_operand.vmem [shape: f32[16,128], index: 0, kind: input, shape index: {}]   ;;  %s299_s1 = inlined_call_operand.hbm [shape: f32[128,128], index: 1, kind: input, shape index: {}]   ;;  %s300_s2 = inlined_call_operand.vmem [shape: f32[1,128], index: 2, kind: input, shape index: {}]   ;;  %s301_s3 = inlined_call_operand.vmem [shape: f32[16,128], index: 3, kind: output, shape index: {}]  }
   0x1   :  { %s16_s13 = sshll.u32 %s248_s12, 4  ;;  %s224_s16 = scalar_lea.hbm %s299_s1, 2048  ;;  %s17_s13 = int_to_ptr.vmem [resolvable:$true] %s16_s13 }
   0x2   :  { %p225_p0 = scmp.ne.s32.totalorder %s299_s1, %s224_s16  ;;  %p228_p1 = scmp.lt.u32.totalorder %s224_s16, %s299_s1 }
   0x4   :  { %p230_p2 = pnand %p228_p1, %p225_p0 }
   0x6   :  { %233 = shalt.err (!%p230_p2)
}
   0x7   :  { %s234_s21 = scalar_lea.vmem %s17_s13, 2048  ;;  %p239_p4 = scmp.lt.s32.totalorder %s17_s13, %s17_s13 }
   0x8   :  { %p235_p3 = scmp.ne.s32.totalorder %s17_s13, %s234_s21  ;;  %p240_p5 = scmp.lt.s32.totalorder %s234_s21, %s234_s21 }
   0xa   :  { %p241_p6 = por %p240_p5, %p239_p4 }
   0xc   :  { %p242_p7 = pnand %p241_p6, %p235_p3 }
   0xe   :  { %245 = shalt.err (!%p242_p7)
}
   0xf   :  { %s249_s22 = smov 128   ;;  %s250_s23 = smov 8  }
  0x10   :  { %22 = dma.hbm_to_vmem [thread:$0]  %s299_s1, 2048, %s17_s13, [#allocation3], %s249_s22, %s249_s22, %s250_s23  }
  0x11   :  { %246 = dma.done.wait [#allocation3], 2048  }
  0x12   :  { %247 = vsyncadd [#allocation3], 4294965248  ;;  %v30_v0 = vld [vmem:[#allocation2] sm:$0xff]  ;;  %v31_v1 = vld [vmem:[#allocation2 + $0x8] sm:$0xff] }
  0x13   :  { %v32_v2 = vld [vmem:[#allocation2 + $0x10] sm:$0xff]  ;;  %v189_v3 = vpack.c.bf16 %v31_v1, %v30_v0  ;;  %v33_v4 = vld [vmem:[#allocation2 + $0x18] sm:$0xff]  ;;  %v34_v6 = vld [vmem:[#allocation2 + $0x20] sm:$0xff] }
  0x14   :  { %v193_v5 = vpack.c.bf16 %v33_v4, %v32_v2  ;;  %v35_v7 = vld [vmem:[#allocation2 + $0x28] sm:$0xff]  ;;  %v28_v9 = vld [vmem:[%s298_s0] sm:$0xff]  ;;  %v36_v10 = vld [vmem:[#allocation2 + $0x30] sm:$0xff] }
  0x15   :  { %190 = vmatprep.subr.bf16.mxu0 %v189_v3  ;;  %v197_v8 = vpack.c.bf16 %v35_v7, %v34_v6  ;;  %v37_v11 = vld [vmem:[#allocation2 + $0x38] sm:$0xff]  ;;  %186 = vmatprep.mubr.f32.mxu0 %v28_v9  ;;  %v38_v13 = vld [vmem:[#allocation2 + $0x40] sm:$0xff]  ;;  %v39_v14 = vld [vmem:[#allocation2 + $0x48] sm:$0xff] }
  0x16   :  { %192 = vmatpush3.bf16.msra.mxu0 %v189_v3  ;;  %v201_v12 = vpack.c.bf16 %v37_v11, %v36_v10  ;;  %v205_v15 = vpack.c.bf16 %v39_v14, %v38_v13  ;;  %v40_v16 = vld [vmem:[#allocation2 + $0x50] sm:$0xff]  ;;  %v41_v17 = vld [vmem:[#allocation2 + $0x58] sm:$0xff]  ;;  %v42_v19 = vld [vmem:[#allocation2 + $0x60] sm:$0xff] }
  0x17   :  { %194 = vmatprep.subr.bf16.mxu0 %v193_v5  ;;  %v209_v18 = vpack.c.bf16 %v41_v17, %v40_v16  ;;  %v43_v20 = vld [vmem:[#allocation2 + $0x68] sm:$0xff]  ;;  %v44_v22 = vld [vmem:[#allocation2 + $0x70] sm:$0xff]  ;;  %v45_v23 = vld [vmem:[#allocation2 + $0x78] sm:$0xff] }
  0x18   :  { %v213_v21 = vpack.c.bf16 %v43_v20, %v42_v19  ;;  %v217_v24 = vpack.c.bf16 %v45_v23, %v44_v22  ;;  %v29_v25 = vld [vmem:[%s298_s0 + $0x8] sm:$0xff]  ;;  %v135_v26 = vld [vmem:[%s300_s2] ss:$0 sm:$0xff] }
  0x1a   :  { %196 = vmatpush3.bf16.msra.mxu0 %v193_v5 }
  0x1b   :  { %198 = vmatprep.subr.bf16.mxu0 %v197_v8 }
  0x1e   :  { %200 = vmatpush3.bf16.msra.mxu0 %v197_v8 }
  0x1f   :  { %202 = vmatprep.subr.bf16.mxu0 %v201_v12 }
  0x22   :  { %204 = vmatpush3.bf16.msra.mxu0 %v201_v12 }
  0x23   :  { %206 = vmatprep.subr.bf16.mxu0 %v205_v15 }
  0x26   :  { %208 = vmatpush3.bf16.msra.mxu0 %v205_v15 }
  0x27   :  { %210 = vmatprep.subr.bf16.mxu0 %v209_v18 }
  0x2a   :  { %212 = vmatpush3.bf16.msra.mxu0 %v209_v18 }
  0x2b   :  { %214 = vmatprep.subr.bf16.mxu0 %v213_v21 }
  0x2e   :  { %216 = vmatpush3.bf16.msra.mxu0 %v213_v21 }
  0x2f   :  { %218 = vmatprep.subr.bf16.mxu0 %v217_v24 }
  0x32   :  { %220 = vmatpush3.bf16.msra.mxu0 %v217_v24 }
  0x35   :  { %187 = vmatmul.mubr.f32.vlgmr.msra.gmra.mrb[0].mxu0 %v29_v25 }
 0x108   :  { %v188_v27 = vpop.f32.mrb[0].mxu0 }
 0x109   :  { %v125_v28 = vadd.f32 %v188_v27, %v135_v26  ;;  %v119_v29 = vpop.f32.mrb[1].mxu0 }
 0x10a   :  { %v120_v30 = vadd.f32 %v135_v26, %v119_v29 }
 0x10b   :  { %129 = vst [vmem:[%s301_s3 + $0x8] sm:$0xff] %v125_v28 }
 0x10c   :  { %128 = vst [vmem:[%s301_s3] sm:$0xff] %v120_v30 }
 0x10d   :  { %134 = vsyncpa [#allocation3], 1 }

</bundles_post_ra>
